<compile_context>
chip_gen: v5e
topology: v5e:2x2
jax: 0.10.0
libtpu: 0.0.40
codegen_flags: <defaults>
</compile_context>

<pallas_src>
import jax
import jax.numpy as jnp
from jax.experimental import pallas as pl
from jax.experimental.pallas import tpu as pltpu


def _round_up(a: int, b: int) -> int:
    return -(-a // b) * b


def _round_down(a: int, b: int) -> int:
    return (a // b) * b


def _chomp_copy_kernel(x_ref, o_ref):
    # Pure tile copy: the chomp is fully encoded in the BlockSpecs / grid.
    # The edge input tile intentionally reads into the chomped tail (and may be
    # clipped at L); the matching output edge tile is mask-written by Pallas.
    o_ref[...] = x_ref[...]


def _tpu_budget() -> tuple[int, int]:
    """Returns (tile_bytes, vmem_limit_bytes) derived from this chip's VMEM."""
    vmem_cap = 64 << 20  # conservative fallback = smallest per-TC VMEM (v7x)
    try:
        info = pltpu.get_tpu_info()
        cap = int(getattr(info, "vmem_capacity_bytes", 0) or 0)
        if cap > 0:
            vmem_cap = cap
    except Exception:
        pass
    # in + out, double-buffered -> pipelined footprint ~= 4 x tile_bytes.
    tile_bytes = min(vmem_cap // 8, 8 << 20)
    # Raise the scoped-VMEM limit past v5e's 16 MiB default while staying safely
    # inside v7x's 64 MiB physical per-TC capacity.
    vmem_limit = max(32 << 20, min(vmem_cap - (16 << 20), 48 << 20))
    return tile_bytes, vmem_limit


def _dimension_semantics():
    """Row axis CORE_PARALLEL on v7x (2 TCs/chip); plain parallel elsewhere."""
    kind = ""
    try:
        kind = jax.devices()[0].device_kind.lower()
    except Exception:
        pass
    if "v7" in kind:
        return (pltpu.CORE_PARALLEL, pltpu.ARBITRARY)
    return ("parallel", "parallel")


def chomp1d(x: jax.Array, chomp_size: int) -> jax.Array:
    """Pallas equivalent of Chomp1d(chomp_size)(x) for x of shape (N, C, L)."""
    assert x.ndim == 3, "expected (N, C, L) input"
    n, c, l = x.shape
    assert 0 < chomp_size < l, "chomp_size must be in (0, L)"
    l_out = l - chomp_size

    r = n * c
    itemsize = x.dtype.itemsize
    # Sublane packing factor: 8 (f32), 16 (bf16), 32 (int8/fp8).
    row_align = max(8, 32 // itemsize)
    tile_bytes, vmem_limit = _tpu_budget()

    # Prefer whole-row (lane-dense) blocks: one contiguous HBM span per block.
    bl_full = _round_up(l_out, 128)
    if row_align * bl_full * itemsize <= tile_bytes:
        bl = bl_full
    else:
        # Very long rows: widest 128-multiple lane block that still fits one
        # row-aligned block in the budget; tile 2D over (rows, lanes).
        bl = max(128, _round_down(tile_bytes // (row_align * itemsize), 128))
    br_budget = max(row_align, _round_down(tile_bytes // (bl * itemsize), row_align))
    br = min(br_budget, _round_up(r, row_align))

    # Flatten (N, C) -> rows; free (contiguous) reshape in XLA.
    xf = x.reshape(r, l)
    grid = (pl.cdiv(r, br), pl.cdiv(l_out, bl))

    out = pl.pallas_call(
        _chomp_copy_kernel,
        out_shape=jax.ShapeDtypeStruct((r, l_out), x.dtype),
        grid=grid,
        in_specs=[
            # Same block shape as the output; offset 0 along L -> the chomped
            # tail beyond L_out is never fetched (except inside one padded
            # edge tile, whose extra columns are masked on writeback).
            pl.BlockSpec((br, bl), lambda i, j: (i, j)),
        ],
        out_specs=pl.BlockSpec((br, bl), lambda i, j: (i, j)),
        compiler_params=pltpu.CompilerParams(
            dimension_semantics=_dimension_semantics(),
            vmem_limit_bytes=vmem_limit,
        ),
        cost_estimate=pl.CostEstimate(
            flops=0,
            transcendentals=0,
            bytes_accessed=2 * r * l_out * itemsize,
        ),
    )(xf)

    return out.reshape(n, c, l_out)


if __name__ == "__main__":
    key = jax.random.PRNGKey(0)

    # Primary check: small shapes consistent with the module (N, C, L).
    N, C, L = 2, 4, 16
    chomp_size = 3
    x = jax.random.normal(key, (N, C, L), dtype=jnp.float32)

    out = jax.block_until_ready(chomp1d(x, chomp_size))
    ref = x[:, :, :-chomp_size]
    assert out.shape == (N, C, L - chomp_size)
    assert out.dtype == x.dtype
    assert jnp.array_equal(out, ref)

    # Secondary check: bf16 (packed sublanes) with a ragged lane edge.
    x2 = jax.random.normal(jax.random.PRNGKey(0), (2, 16, 256)).astype(jnp.bfloat16)
    out2 = jax.block_until_ready(chomp1d(x2, 2))
    assert out2.shape == (2, 16, 254)
    assert out2.dtype == x2.dtype
    assert jnp.array_equal(out2, x2[:, :, :-2])

    print("KERNEL_OK")
</pallas_src>

<mosaic_0001>
module attributes {stable_mosaic.version = 11 : i64} {
  func.func @_chomp_copy_kernel(%arg0: i32, %arg1: i32, %arg2: memref<8x128xf32, #tpu.memory_space<vmem>>, %arg3: memref<8x128xf32, #tpu.memory_space<vmem>>) attributes {dimension_semantics = [#tpu.dimension_semantics<parallel>, #tpu.dimension_semantics<parallel>], iteration_bounds = array<i64: 1, 1>, scalar_prefetch = 0 : i64, scratch_operands = 0 : i64, tpu.core_type = #tpu.core_type<tc>, window_params = [{transform_indices = @transform_0, window_bounds = array<i64: 8, 128>}, {transform_indices = @transform_1, window_bounds = array<i64: 8, 128>}]} {
    %c0 = arith.constant 0 : index
    %c0_0 = arith.constant 0 : index
    %0 = vector.load %arg2[%c0, %c0_0] : memref<8x128xf32, #tpu.memory_space<vmem>>, vector<8x128xf32>
    %c0_1 = arith.constant 0 : index
    %c0_2 = arith.constant 0 : index
    %1 = vector.load %arg3[%c0_1, %c0_2] : memref<8x128xf32, #tpu.memory_space<vmem>>, vector<8x128xf32>
    tpu.vector_store %arg3[%c0_1, %c0_2], %0 {strides = array<i32>} : memref<8x128xf32, #tpu.memory_space<vmem>>, vector<8x128xf32>,
    return
  }
  func.func @transform_0(%arg0: i32, %arg1: i32) -> (i32, i32) {
    %c0_i32 = arith.constant 0 : i32
    return %arg0, %arg1 : i32, i32
  }
  func.func @transform_1(%arg0: i32, %arg1: i32) -> (i32, i32) {
    %c0_i32 = arith.constant 0 : i32
    return %arg0, %arg1 : i32, i32
  }
}

</mosaic_0001>

<bundles_post_ra>
// kernel: tpu_custom_call.1
= control target key start
LH: loop header
LB: loop body
LE: loop exit
PB: predicated region body
PF: predicated region fallthrough
CT: control target
= control target key end

     0   :  { %6 = vsyncpa [#allocation3], 0  ;;  %s114_s0 = inlined_call_operand.hbm [shape: f32[8,16], index: 0, kind: input, shape index: {}]   ;;  %s115_s1 = inlined_call_operand.hbm [shape: f32[8,13], index: 1, kind: output, shape index: {}]  }
   0x1   :  { %7 = vsyncpa [#allocation4], 0  ;;  %s13_s8 = sshll.u32 %s114_s0, 4  ;;  %s96_s9 = smov [#allocation2]   ;;  %s14_s8 = int_to_ptr.hbm [resolvable:$true] %s13_s8 }
   0x2   :  { %s15_s10 = sshll.u32 %s96_s9, 4  ;;  %s16_s10 = int_to_ptr.vmem [resolvable:$true] %s15_s10 }
   0x3   :  { %18 = dma.hbm_to_vmem [thread:$0]  %s14_s8, 128, %s16_s10, [#allocation3]  }
   0x4   :  { %92 = dma.done.wait [#allocation3], 128  }
   0x5   :  { %93 = vsyncadd [#allocation3], 4294967168  ;;  %s97_s11 = smov [#allocation5]   ;;  %s32_s15 = sshll.u32 %s115_s1, 4  ;;  %v23_v0 = vld [vmem:[#allocation2] sm:$0xff]  ;;  %s33_s15 = int_to_ptr.hbm [resolvable:$true] %s32_s15 }
   0x6   :  { %s30_s12 = sshll.u32 %s97_s11, 4  ;;  %24 = vst [vmem:[#allocation5] sm:$0xff] %v23_v0  ;;  %s31_s12 = int_to_ptr.vmem [resolvable:$true] %s30_s12 }
   0x7   :  { %35 = dma.vmem_to_hbm [thread:$0]  %s31_s12, 128, %s33_s15, [#allocation4]  }
   0x8   :  { %94 = dma.done.wait [#allocation4], 128  }
   0x9   :  { %95 = vsyncadd [#allocation4], 4294967168 }
   0xa   :  { %40 = vsyncpa [#allocation3], 1 }
   0xb   :  { %41 = vsyncpa [#allocation4], 1 }

</bundles_post_ra>
